<compile_context>
chip_gen: v7x
topology: tpu7x:2x2x1
jax: 0.10.0
libtpu: 0.0.40
codegen_flags: <defaults>
</compile_context>

<pallas_src>
import jax
import jax.numpy as jnp
from jax.experimental import pallas as pl
from jax.experimental.pallas import tpu as pltpu

# Target-network dimensions (tiny MLP target module).
IN_DIM = 32
HID_DIM = 64
OUT_DIM = 16
BATCH = 8

PAD = 128  # lane width of a TPU vreg

# Tight packed parameter slab (row offsets; every section start is a multiple of 8):
#   [  0: 32) : W1^T  (IN_DIM rows;  lanes [:HID_DIM] meaningful, rest zero)
#   [ 32: 40) : bias block: row 32 = b1 (lanes [:HID_DIM]), row 33 = b2 (lanes [:OUT_DIM])
#   [ 40:104) : W2^T  (HID_DIM rows; lanes [:OUT_DIM] meaningful, rest zero)
W1_OFF = 0
BIAS_OFF = IN_DIM              # 32
W2_OFF = IN_DIM + 8            # 40
PACK_ROWS = W2_OFF + HID_DIM   # 104   (was 272 in v2)

NUM_PARAMS = HID_DIM * IN_DIM + HID_DIM + OUT_DIM * HID_DIM + OUT_DIM  # 3152

MAX_GROUP = 8  # instances per grid step (per-step fixed overhead amortization)


def _mlp_kernel(p_ref, x_ref, o_ref):
    """G target-net forwards per grid step; bf16 operands, f32 accumulation."""
    x = x_ref[...]                                         # (G, B, IN_DIM)   bf16
    w1t = p_ref[:, W1_OFF:W1_OFF + IN_DIM, :]              # (G, IN_DIM, 128) bf16
    w2t = p_ref[:, W2_OFF:W2_OFF + HID_DIM, :]             # (G, HID_DIM, 128) bf16
    bias = p_ref[:, BIAS_OFF:BIAS_OFF + 8, :].astype(jnp.float32)  # (G, 8, 128)
    b1 = bias[:, 0:1, :]                                   # (G, 1, 128)
    b2 = bias[:, 1:2, :]                                   # (G, 1, 128)

    # Layer 1: K = IN_DIM contraction, batched over the G grouped instances.
    h = jnp.einsum('gbk,gkn->gbn', x, w1t,
                   preferred_element_type=jnp.float32) + b1
    h = jnp.maximum(h, 0.0)                                # ReLU (padding stays 0)
    # Layer 2: only lanes [:HID_DIM] of h are meaningful -> K = HID_DIM contraction.
    h = h[:, :, :HID_DIM].astype(jnp.bfloat16)
    y = jnp.einsum('gbk,gkn->gbn', h, w2t,
                   preferred_element_type=jnp.float32) + b2
    o_ref[...] = y.astype(o_ref.dtype)                     # unmasked (G, B, 128) store


def _pack_params(param_vector):
    """Slice the flat vector in named_parameters() order (row-major .view()),
    pre-transpose the weights, and pack tightly into one (104, 128) bf16 slab."""
    pv = param_vector.reshape(-1).astype(jnp.float32)
    off = 0
    w1 = pv[off:off + HID_DIM * IN_DIM].reshape(HID_DIM, IN_DIM)   # "0.weight"
    off += HID_DIM * IN_DIM
    b1 = pv[off:off + HID_DIM]                                      # "0.bias"
    off += HID_DIM
    w2 = pv[off:off + OUT_DIM * HID_DIM].reshape(OUT_DIM, HID_DIM)  # "2.weight"
    off += OUT_DIM * HID_DIM
    b2 = pv[off:off + OUT_DIM]                                      # "2.bias"

    w1t = jnp.pad(w1.T, ((0, 0), (0, PAD - HID_DIM)))               # (32, 128)
    bias = jnp.zeros((8, PAD), jnp.float32)
    bias = bias.at[0, :HID_DIM].set(b1).at[1, :OUT_DIM].set(b2)     # (8, 128)
    w2t = jnp.pad(w2.T, ((0, 0), (0, PAD - OUT_DIM)))               # (64, 128)
    return jnp.concatenate([w1t, bias, w2t], axis=0).astype(jnp.bfloat16)  # (104,128)


def _choose_group(n):
    """Instances per grid step: amortize per-step overhead but keep >=2 grid steps
    (two-TensorCore sharding on v7x) whenever n >= 2."""
    if n <= 1:
        return 1
    return max(1, min(MAX_GROUP, n // 2))


def _run_packed(packed, x):
    """packed: (N, 104, 128) bf16, x: (N, B, IN_DIM) bf16 -> (N, B, 128) f32."""
    n, b = x.shape[0], x.shape[1]
    g = _choose_group(n)
    num_steps = -(-n // g)
    n_pad = num_steps * g
    if n_pad != n:
        packed = jnp.pad(packed, ((0, n_pad - n), (0, 0), (0, 0)))
        x = jnp.pad(x, ((0, n_pad - n), (0, 0), (0, 0)))

    flops = 2 * n_pad * b * (IN_DIM * HID_DIM + HID_DIM * OUT_DIM)
    bytes_accessed = packed.size * 2 + x.size * 2 + n_pad * b * PAD * 4

    out = pl.pallas_call(
        _mlp_kernel,
        out_shape=jax.ShapeDtypeStruct((n_pad, b, PAD), jnp.float32),
        grid=(num_steps,),
        in_specs=[
            pl.BlockSpec((g, PACK_ROWS, PAD), lambda i: (i, 0, 0)),
            pl.BlockSpec((g, b, IN_DIM), lambda i: (i, 0, 0)),
        ],
        out_specs=pl.BlockSpec((g, b, PAD), lambda i: (i, 0, 0)),
        compiler_params=pltpu.CompilerParams(
            dimension_semantics=("parallel",)),
        cost_estimate=pl.CostEstimate(flops=flops, transcendentals=0,
                                      bytes_accessed=bytes_accessed),
    )(packed, x)
    return out[:n]


@jax.jit
def functional_param_vector_wrapper(param_vector, raw):
    """JAX equivalent of FunctionalParamVectorWrapper.forward for the MLP target."""
    packed = _pack_params(param_vector)[None]            # (1, 104, 128) bf16
    x = raw.astype(jnp.bfloat16)[None]                   # (1, B, IN_DIM) bf16
    out = _run_packed(packed, x)
    return out[0, :, :OUT_DIM]


@jax.jit
def functional_param_vector_wrapper_batched(param_vectors, raws):
    """N hypernet-generated param vectors -> N target-net forwards in ONE kernel."""
    packed = jax.vmap(_pack_params)(param_vectors)       # (N, 104, 128) bf16
    x = raws.astype(jnp.bfloat16)                        # (N, B, IN_DIM) bf16
    out = _run_packed(packed, x)
    return out[:, :, :OUT_DIM]


def _split(pv):
    off = 0
    w1 = pv[off:off + HID_DIM * IN_DIM].reshape(HID_DIM, IN_DIM)
    off += HID_DIM * IN_DIM
    b1 = pv[off:off + HID_DIM]
    off += HID_DIM
    w2 = pv[off:off + OUT_DIM * HID_DIM].reshape(OUT_DIM, HID_DIM)
    off += OUT_DIM * HID_DIM
    b2 = pv[off:off + OUT_DIM]
    return w1, b1, w2, b2


def _ref_forward(pv, x):
    """Exact torch-semantics reference in f32."""
    w1, b1, w2, b2 = _split(pv)
    return jnp.maximum(x @ w1.T + b1, 0.0) @ w2.T + b2


def _ref_forward_bf16(pv, x):
    """Reference with the same bf16 operand rounding the kernel applies."""
    f = lambda a: a.astype(jnp.bfloat16).astype(jnp.float32)
    w1, b1, w2, b2 = _split(pv)
    h = jnp.maximum(f(x) @ f(w1).T + f(b1), 0.0)
    return f(h) @ f(w2).T + f(b2)


if __name__ == "__main__":
    key = jax.random.PRNGKey(0)
    k_params, k_raw, k_bparams, k_braw = jax.random.split(key, 4)

    # Single instance (the module's forward(param_vector, raw)).
    param_vector = 0.05 * jax.random.normal(k_params, (NUM_PARAMS,), dtype=jnp.float32)
    raw = jax.random.normal(k_raw, (BATCH, IN_DIM), dtype=jnp.float32)

    out = jax.block_until_ready(functional_param_vector_wrapper(param_vector, raw))
    assert out.shape == (BATCH, OUT_DIM), out.shape
    ref_bf16 = _ref_forward_bf16(param_vector, raw)
    ref_f32 = _ref_forward(param_vector, raw)
    assert jnp.allclose(out, ref_bf16, atol=5e-3, rtol=5e-2), "single-instance mismatch (bf16 ref)"
    assert jnp.allclose(out, ref_f32, atol=3e-2, rtol=3e-2), "single-instance mismatch (f32 ref)"

    # Batched variant: many generated param vectors grouped under one pallas_call.
    N = 8
    param_vectors = 0.05 * jax.random.normal(k_bparams, (N, NUM_PARAMS), dtype=jnp.float32)
    raws = jax.random.normal(k_braw, (N, BATCH, IN_DIM), dtype=jnp.float32)

    bout = jax.block_until_ready(
        functional_param_vector_wrapper_batched(param_vectors, raws))
    assert bout.shape == (N, BATCH, OUT_DIM), bout.shape
    bref_bf16 = jax.vmap(_ref_forward_bf16)(param_vectors, raws)
    bref_f32 = jax.vmap(_ref_forward)(param_vectors, raws)
    assert jnp.allclose(bout, bref_bf16, atol=5e-3, rtol=5e-2), "batched mismatch (bf16 ref)"
    assert jnp.allclose(bout, bref_f32, atol=3e-2, rtol=3e-2), "batched mismatch (f32 ref)"

    print("KERNEL_OK")
</pallas_src>

<mosaic_0001>
module attributes {stable_mosaic.version = 11 : i64} {
  func.func @_mlp_kernel(%arg0: i32, %arg1: memref<1x104x128xbf16, #tpu.memory_space<vmem>>, %arg2: memref<1x8x32xbf16, #tpu.memory_space<vmem>>, %arg3: memref<1x8x128xf32, #tpu.memory_space<vmem>>) attributes {dimension_semantics = [#tpu.dimension_semantics<parallel>], iteration_bounds = array<i64: 1>, scalar_prefetch = 0 : i64, scratch_operands = 0 : i64, tpu.core_type = #tpu.core_type<tc>, window_params = [{transform_indices = @transform_0, window_bounds = array<i64: 1, 104, 128>}, {transform_indices = @transform_1, window_bounds = array<i64: 1, 8, 32>}, {transform_indices = @transform_2, window_bounds = array<i64: 1, 8, 128>}]} {
    %c0 = arith.constant 0 : index
    %c0_0 = arith.constant 0 : index
    %c0_1 = arith.constant 0 : index
    %0 = vector.load %arg2[%c0, %c0_0, %c0_1] : memref<1x8x32xbf16, #tpu.memory_space<vmem>>, vector<1x8x32xbf16>
    %c0_2 = arith.constant 0 : index
    %c0_3 = arith.constant 0 : index
    %c0_4 = arith.constant 0 : index
    %1 = vector.load %arg1[%c0_2, %c0_3, %c0_4] : memref<1x104x128xbf16, #tpu.memory_space<vmem>>, vector<1x32x128xbf16>
    %c0_5 = arith.constant 0 : index
    %c40 = arith.constant 40 : index
    %c0_6 = arith.constant 0 : index
    %2 = vector.load %arg1[%c0_5, %c40, %c0_6] : memref<1x104x128xbf16, #tpu.memory_space<vmem>>, vector<1x64x128xbf16>
    %c0_7 = arith.constant 0 : index
    %c32 = arith.constant 32 : index
    %c0_8 = arith.constant 0 : index
    %3 = vector.load %arg1[%c0_7, %c32, %c0_8] : memref<1x104x128xbf16, #tpu.memory_space<vmem>>, vector<1x8x128xbf16>
    %4 = arith.extf %3 : vector<1x8x128xbf16> to vector<1x8x128xf32>
    %5 = vector.extract_strided_slice %4 {offsets = [0, 0, 0], sizes = [1, 1, 128], strides = [1, 1, 1]} : vector<1x8x128xf32> to vector<1x1x128xf32>
    %6 = vector.extract_strided_slice %4 {offsets = [0, 1, 0], sizes = [1, 1, 128], strides = [1, 1, 1]} : vector<1x8x128xf32> to vector<1x1x128xf32>
    "tpu.trace_start"() <{level = 10 : i32, message = "gbk,gkn->gbn"}> : () -> ()
    %cst = arith.constant dense<0.000000e+00> : vector<1x8x128xf32>
    %7 = tpu.matmul %0, %1, %cst {dimension_numbers = #tpu.dot_dimension_numbers<[2], [1], [1], [2], [0, 0, 0, 1, 1, 2], [0], [0]>} : vector<1x8x32xbf16>, vector<1x32x128xbf16>, vector<1x8x128xf32> -> vector<1x8x128xf32>
    "tpu.trace_stop"() : () -> ()
    %8 = vector.broadcast %5 : vector<1x1x128xf32> to vector<1x8x128xf32>
    %9 = arith.addf %7, %8 : vector<1x8x128xf32>
    %cst_9 = arith.constant 0.000000e+00 : f32
    %10 = vector.broadcast %cst_9 : f32 to vector<1x8x128xf32>
    %11 = arith.maximumf %9, %10 : vector<1x8x128xf32>
    %12 = vector.extract_strided_slice %11 {offsets = [0, 0, 0], sizes = [1, 8, 64], strides = [1, 1, 1]} : vector<1x8x128xf32> to vector<1x8x64xf32>
    %13 = arith.truncf %12 : vector<1x8x64xf32> to vector<1x8x64xbf16>
    "tpu.trace_start"() <{level = 10 : i32, message = "gbk,gkn->gbn"}> : () -> ()
    %cst_10 = arith.constant dense<0.000000e+00> : vector<1x8x128xf32>
    %14 = tpu.matmul %13, %2, %cst_10 {dimension_numbers = #tpu.dot_dimension_numbers<[2], [1], [1], [2], [0, 0, 0, 1, 1, 2], [0], [0]>} : vector<1x8x64xbf16>, vector<1x64x128xbf16>, vector<1x8x128xf32> -> vector<1x8x128xf32>
    "tpu.trace_stop"() : () -> ()
    %15 = vector.broadcast %6 : vector<1x1x128xf32> to vector<1x8x128xf32>
    %16 = arith.addf %14, %15 : vector<1x8x128xf32>
    %c0_11 = arith.constant 0 : index
    %c0_12 = arith.constant 0 : index
    %c0_13 = arith.constant 0 : index
    %17 = vector.load %arg3[%c0_11, %c0_12, %c0_13] : memref<1x8x128xf32, #tpu.memory_space<vmem>>, vector<1x8x128xf32>
    tpu.vector_store %arg3[%c0_11, %c0_12, %c0_13], %16 {strides = array<i32>} : memref<1x8x128xf32, #tpu.memory_space<vmem>>, vector<1x8x128xf32>,
    return
  }
  func.func @transform_0(%arg0: i32) -> (i32, i32, i32) {
    %c0_i32 = arith.constant 0 : i32
    %c0_i32_0 = arith.constant 0 : i32
    %c0_i32_1 = arith.constant 0 : i32
    return %arg0, %c0_i32, %c0_i32_0 : i32, i32, i32
  }
  func.func @transform_1(%arg0: i32) -> (i32, i32, i32) {
    %c0_i32 = arith.constant 0 : i32
    %c0_i32_0 = arith.constant 0 : i32
    %c0_i32_1 = arith.constant 0 : i32
    return %arg0, %c0_i32, %c0_i32_0 : i32, i32, i32
  }
  func.func @transform_2(%arg0: i32) -> (i32, i32, i32) {
    %c0_i32 = arith.constant 0 : i32
    %c0_i32_0 = arith.constant 0 : i32
    %c0_i32_1 = arith.constant 0 : i32
    return %arg0, %c0_i32, %c0_i32_0 : i32, i32, i32
  }
}

</mosaic_0001>

<bundles_post_ra>
// kernel: functional_param_vector_wrapper.1
= control target key start
LH: loop header
LB: loop body
LE: loop exit
PB: predicated region body
PF: predicated region fallthrough
CT: control target
= control target key end

     0   :  { %v210_v0 = vmov 0.0   ;;  %vm211_vm0 = vmmov 0   ;;  %vm43_vm1 = vcmask 261120   ;;  %v27_v8 = vlaneseq  ;;  %s254_s0 = inlined_call_operand.vmem [shape: bf16[1,104,128], index: 0, kind: input, shape index: {}]   ;;  %s255_s1 = inlined_call_operand.vmem [shape: bf16[1,8,32], index: 1, kind: input, shape index: {}]   ;;  %s256_s2 = inlined_call_operand.vmem [shape: f32[1,8,128], index: 2, kind: output, shape index: {}]  }
   0x1   :  { %182 = vmatprep.subr.bf16.mxu0 %v210_v0  ;;  %v204_v1 = vld [vmem:[%s254_s0] sm:$0xff]   ;;  %186 = vmatprep.mubr.msk.bf16.mxu0 %vm211_vm0, %v210_v0  ;;  %v205_v2 = vld [vmem:[%s254_s0 + $0x8] sm:$0xff]   ;;  %v206_v3 = vld [vmem:[%s254_s0 + $0x14] sm:$0xff]   ;;  %vm117_vm2 = vcmask 523264  }
   0x2   :  { %190 = vmatprep.subr.bf16.mxu1 %v210_v0  ;;  %198 = vmatprep.mubr.msk.bf16.mxu1 %vm211_vm0, %v210_v0  ;;  %v207_v4 = vld [vmem:[%s254_s0 + $0x1c] sm:$0xff]   ;;  %v208_v6 = vld [vmem:[%s254_s0 + $0x24] sm:$0xff]   ;;  %v209_v7 = vld [vmem:[%s254_s0 + $0x2c] sm:$0xff]   ;;  %v28_v9 = vshrl.u32 %v27_v8, 7 }
   0x3   :  { %183 = vmatpush3.bf16.msra.mxu0 %v204_v1  ;;  %191 = vmatpush3.bf16.msra.mxu1 %v206_v3  ;;  %v12_v5 = vld [vmem:[%s255_s1] sm:$0xf]  ;;  %v25_v10 = vld [vmem:[%s254_s0 + $0x10] sm:$0xf] }
   0x4   :  { %184 = vmatprep.subr.bf16.mxu0 %v210_v0  ;;  %192 = vmatprep.subr.bf16.mxu1 %v210_v0  ;;  %v26_v11 = vunpack.c.l.bf16 %v25_v10  ;;  %v29_v12 = vsub.s32 0, %v28_v9  ;;  %v91_v21 = vsub.s32 1, %v28_v9 }
   0x6   :  { %v30_v13 = vrot.slane %v26_v11, %v29_v12  ;;  %v92_v22 = vrot.slane %v26_v11, %v91_v21 }
   0x7   :  { %185 = vmatpush3.bf16.msra.mxu0 %v205_v2  ;;  %193 = vmatpush3.bf16.msra.mxu1 %v207_v4 }
   0x8   :  { %194 = vmatprep.subr.bf16.mxu1 %v210_v0 }
   0xa   :  { %187 = vmatmul.mubr.msk.bf16.vlgmr.msra.gmra.mrb[0].mxu0 %vm43_vm1, %v12_v5 }
   0xb   :  { %195 = vmatpush3.bf16.msra.mxu1 %v208_v6 }
   0xc   :  { %196 = vmatprep.subr.bf16.mxu1 %v210_v0 }
   0xf   :  { %197 = vmatpush3.bf16.msra.mxu1 %v209_v7 }
  0xdd   :  { %v81_v14 = vpop.f32.mrb[0].mxu0 }
  0xde   :  { %v82_v15 = vadd.f32 %v81_v14, %v30_v13  ;;  %v188_v16 = vpop.f32.mrb[1].mxu0 }
  0xdf   :  { %v84_v17 = vpop.f32.mrb[2].mxu0 }
  0xe0   :  { %v87_v18 = vmax.f32 %v82_v15, 0.0  ;;  %v189_v19 = vpop.f32.mrb[3].mxu0 }
  0xe2   :  { %v88_v20 = vpack.c.bf16 %v87_v18, %v87_v18 }
  0xe4   :  { %199 = vmatmul.mubr.msk.bf16.vlgmr.msra.gmra.mrb[0].mxu1 %vm117_vm2, %v88_v20 }
 0x1b7   :  { %v155_v23 = vpop.f32.mrb[0].mxu1 }
 0x1b8   :  { %v156_v24 = vadd.f32 %v155_v23, %v92_v22  ;;  %v200_v25 = vpop.f32.mrb[1].mxu1 }
 0x1b9   :  { %v158_v26 = vpop.f32.mrb[2].mxu1 }
 0x1ba   :  { %161 = vst [vmem:[%s256_s2] sm:$0xff] %v156_v24  ;;  %v201_v27 = vpop.f32.mrb[3].mxu1 }

</bundles_post_ra>
